<compile_context>
chip_gen: v5e
topology: v5e:2x2
jax: 0.10.0
libtpu: 0.0.40
codegen_flags: <defaults>
</compile_context>

<pallas_src>
import functools
import math

import jax
import jax.numpy as jnp
from jax.experimental import pallas as pl
from jax.experimental.pallas import tpu as pltpu


_LOG2 = math.log(2.0)
_LOG_2PI = math.log(2.0 * math.pi)


def _f32(x):
    # Only insert a convert when the input is not already f32 (review item 6).
    return x if x.dtype == jnp.float32 else x.astype(jnp.float32)


def _tanh_and_logdet(x):
    """tanh(x) and sum over the last dim of log|d tanh/dx|, sharing one exp.

    log|d tanh(x)/dx| = 2*(log2 + x - softplus(2x)); softplus(2x) is computed stably as
    max(2x, 0) + log1p(exp(-2|x|)), and the same e = exp(-2|x|) is reused for
    tanh(x) = sign(x)*(1-e)/(1+e).  (pl.reciprocal(1+e, approx=True) could replace the divide
    when EUP-bound; we keep the exact divide so results match the f32 reference tightly.)
    """
    e = jnp.exp(-2.0 * jnp.abs(x))
    softplus_2x = jnp.maximum(2.0 * x, 0.0) + jnp.log1p(e)
    log_det = 2.0 * (_LOG2 + x - softplus_2x)
    # sign via where; the x == 0 case is fine because (1 - e) == 0 there.
    tanh_x = jnp.where(x < 0.0, -1.0, 1.0) * (1.0 - e) / (1.0 + e)
    return tanh_x, jnp.sum(log_det, axis=1)


def _realnvp_kernel(
    z_ref, emb_ref,
    w1e1_ref, w1c1_ref, w2_1_ref, b2_1_ref,      # coupling 1 (parity='odd'), packed
    w1e2_ref, w1c2_ref, w2_2_ref, b2_2_ref,      # coupling 2 (parity='even'), packed
    action_ref, log_pi_ref,
    *, action_size, copy1, copy2):
    A = action_size
    z = _f32(z_ref[...])        # (TB, A)
    emb = _f32(emb_ref[...])    # (TB, 2A)

    # normal_log_prob(mu=0, sigma=1, z), summed over the action dim.
    log_pi = -0.5 * A * _LOG_2PI - 0.5 * jnp.sum(z * z, axis=1)          # (TB,)

    def coupling(copy, transform, w1e_ref, w1c_ref, w2_ref, b2_ref, out_width):
        # prenets (Linear no-bias + ReLU) for scale & translation fused into one matmul pair;
        # output Linears (+bias) fused via a block-diagonal weight built in the wrapper.
        h = jnp.maximum(
            jnp.dot(emb, _f32(w1e_ref[...]), preferred_element_type=jnp.float32)
            + jnp.dot(copy, _f32(w1c_ref[...]), preferred_element_type=jnp.float32),
            0.0)                                                          # (TB, 2A)
        st = (jnp.dot(h, _f32(w2_ref[...]), preferred_element_type=jnp.float32)
              + _f32(b2_ref[...]))                                        # (TB, 2*out_width)
        s = st[:, :out_width]
        t = st[:, out_width:]
        out = t + transform * jnp.exp(s)
        return out, jnp.sum(s, axis=1)

    # --- coupling 1, parity='odd': copy = z[:, :c1], transform = z[:, c1:] ---
    z_copy1 = z[:, :copy1]
    out1, ldj1 = coupling(z_copy1, z[:, copy1:],
                          w1e1_ref, w1c1_ref, w2_1_ref, b2_1_ref, A - copy1)
    log_pi = log_pi - ldj1
    # logical state now: z = concat(z_copy1, out1)

    # --- coupling 2, parity='even': copy = last c2 cols = out1, transform = first c1 cols ---
    out2, ldj2 = coupling(out1, z_copy1,
                          w1e2_ref, w1c2_ref, w2_2_ref, b2_2_ref, A - copy2)
    log_pi = log_pi - ldj2
    # logical state now: z = concat(out2, out1)   (out2 width = A - c2 = c1)

    # --- tanh squashing + its log-det-jacobian (shared exp) ---
    a_lo, ldj_lo = _tanh_and_logdet(out2)
    a_hi, ldj_hi = _tanh_and_logdet(out1)
    log_pi = log_pi - ldj_lo - ldj_hi

    action_ref[:, :copy1] = a_lo.astype(action_ref.dtype)
    action_ref[:, copy1:] = a_hi.astype(action_ref.dtype)
    # Lane-dense (1, TILE_B) store instead of a (TILE_B, 1) masked 1-lane store; the
    # sublane->lane relayout of the reduction result rides the otherwise-idle XLU.
    log_pi_ref[...] = log_pi[None, :].astype(log_pi_ref.dtype)


# ----------------------------- parameters & packing -----------------------------

def init_realnvp_params(key, action_size, state_emb_size):
    """Random parameters mirroring catalyst's CouplingLayer nets (RealNVPPolicy defaults).

    *_prenet: Linear(2A + copy -> A), no bias (bias=False default), ReLU.   (Kaiming-normal)
    *_net:    Linear(A -> A - copy), bias, no activation.                   (outer_init: U(+-3e-3))
    """
    A = action_size
    params = {}
    for name, c in (("coupling1", A // 2), ("coupling2", A - A // 2)):
        key, *ks = jax.random.split(key, 7)
        fan_in = state_emb_size + c
        std = math.sqrt(2.0 / fan_in)
        params[name] = dict(
            w1s=jax.random.normal(ks[0], (fan_in, A), jnp.float32) * std,
            w1t=jax.random.normal(ks[1], (fan_in, A), jnp.float32) * std,
            w2s=jax.random.uniform(ks[2], (A, A - c), jnp.float32, -3e-3, 3e-3),
            w2t=jax.random.uniform(ks[3], (A, A - c), jnp.float32, -3e-3, 3e-3),
            b2s=jax.random.uniform(ks[4], (A - c,), jnp.float32, -3e-3, 3e-3),
            b2t=jax.random.uniform(ks[5], (A - c,), jnp.float32, -3e-3, 3e-3),
        )
    return params


def _pack_coupling(p, action_size, state_emb_size, copy_size):
    """Pack one CouplingLayer's 6 weight tensors into 4 kernel-friendly matrices."""
    A = action_size
    w_out = A - copy_size
    w1 = jnp.concatenate([p["w1s"], p["w1t"]], axis=1)          # (2A + c, 2A): cols [s | t]
    w1_emb = w1[:state_emb_size]                                # (2A, 2A) acts on state embedding
    w1_cp = w1[state_emb_size:]                                 # (c,  2A) acts on action_copy
    w2 = jnp.zeros((2 * A, 2 * w_out), jnp.float32)             # block-diag [W2s 0; 0 W2t]
    w2 = w2.at[:A, :w_out].set(p["w2s"]).at[A:, w_out:].set(p["w2t"])
    b2 = jnp.concatenate([p["b2s"], p["b2t"]])[None, :]         # (1, 2*w_out)
    return w1_emb, w1_cp, w2, b2


# ----------------------------- Pallas wrapper -----------------------------

def realnvp_policy_forward(state_embedding, z, params, *, block_b=1024):
    """Pallas-backed RealNVPPolicy forward for a given standard-normal sample z.

    state_embedding: (B, 2*A), z: (B, A).  Returns (action (B, A), log_pi (B,)).
    Note: at tiny B, plain jnp/XLA is preferable (launch + ~0.35us/grid-step overhead);
    the kernel pays off for B in the thousands.
    """
    B, A = z.shape
    emb_size = state_embedding.shape[1]
    assert emb_size == 2 * A, "state embedding must have size 2 * action_size"
    c1 = A // 2
    c2 = A - A // 2

    packed1 = _pack_coupling(params["coupling1"], A, emb_size, c1)
    packed2 = _pack_coupling(params["coupling2"], A, emb_size, c2)
    weight_args = (*packed1, *packed2)

    # Batch-tiled grid so BlockSpec double-buffers HBM<->VMEM; weights use full-array blocks
    # with a constant index_map so they stay resident in VMEM across all grid steps.
    if B <= block_b:
        tile_b = B                      # single full block (block may be < 8 rows only if full)
    else:
        assert block_b % 128 == 0, "block_b must be a multiple of 128 when tiling"
        tile_b = block_b
    grid = (pl.cdiv(B, tile_b),)

    kernel = functools.partial(_realnvp_kernel, action_size=A, copy1=c1, copy2=c2)

    def _batch_spec(width):
        return pl.BlockSpec((tile_b, width), lambda i: (i, 0))

    def _full_spec(arr):
        return pl.BlockSpec(arr.shape, lambda i: (0, 0))

    action, log_pi = pl.pallas_call(
        kernel,
        out_shape=(
            jax.ShapeDtypeStruct((B, A), z.dtype),
            jax.ShapeDtypeStruct((1, B), jnp.float32),      # lane-dense log_pi slab
        ),
        grid=grid,
        in_specs=[
            _batch_spec(A),             # z
            _batch_spec(emb_size),      # state embedding
            *[_full_spec(w) for w in weight_args],
        ],
        out_specs=(
            _batch_spec(A),                                  # action
            pl.BlockSpec((1, tile_b), lambda i: (0, i)),     # log_pi: lanes = batch
        ),
        compiler_params=pltpu.CompilerParams(
            # Independent batch tiles -> shard across both TensorCores on v7x
            # (no-op on single-TC v5e/v6e).
            dimension_semantics=("parallel",),
        ),
    )(z, state_embedding, *weight_args)

    return action, log_pi.reshape(B)


def realnvp_policy(state_embedding, params, *, rng=None, deterministic=False,
                   with_log_pi=True, block_b=1024):
    """Full RealNVPPolicy.forward: sample z, run the fused Pallas kernel."""
    B, emb_size = state_embedding.shape
    A = emb_size // 2
    if deterministic:
        z = jnp.zeros((B, A), jnp.float32)
    else:
        # TODO(synk): normal_sample is drawn with jax.random in the wrapper, not in-kernel PRNG.
        z = jax.random.normal(rng, (B, A), jnp.float32)
    action, log_pi = realnvp_policy_forward(state_embedding, z, params, block_b=block_b)
    return (action, log_pi) if with_log_pi else action


# ----------------------------- pure-JAX reference -----------------------------

def _reference_forward(state_embedding, z, params):
    """Direct transcription of the PyTorch module (HIGHEST-precision dots)."""
    _, A = z.shape
    c1 = A // 2
    c2 = A - A // 2
    hp = jax.lax.Precision.HIGHEST

    log_pi = jnp.sum(-0.5 * _LOG_2PI - 0.5 * z * z, axis=1)

    def coupling(z, log_pi, p, parity):
        c = c1 if parity == "odd" else c2
        if parity == "odd":
            copy, transform = z[:, :c], z[:, c:]
        else:
            copy, transform = z[:, -c:], z[:, :-c]
        x = jnp.concatenate([state_embedding, copy], axis=1)
        s = jnp.maximum(jnp.dot(x, p["w1s"], precision=hp), 0.0)
        s = jnp.dot(s, p["w2s"], precision=hp) + p["b2s"]
        t = jnp.maximum(jnp.dot(x, p["w1t"], precision=hp), 0.0)
        t = jnp.dot(t, p["w2t"], precision=hp) + p["b2t"]
        out = t + transform * jnp.exp(s)
        z = jnp.concatenate([copy, out] if parity == "odd" else [out, copy], axis=1)
        return z, log_pi - jnp.sum(s, axis=1)

    z, log_pi = coupling(z, log_pi, params["coupling1"], "odd")
    z, log_pi = coupling(z, log_pi, params["coupling2"], "even")

    softplus_2z = jnp.maximum(2.0 * z, 0.0) + jnp.log1p(jnp.exp(-jnp.abs(2.0 * z)))
    log_det = jnp.sum(2.0 * (_LOG2 + z - softplus_2z), axis=1)
    return jnp.tanh(z), log_pi - log_det


if __name__ == "__main__":
    # NOTE: at these tiny shapes plain jnp would beat any Pallas kernel (launch + grid-step
    # overhead dominates); the kernel is run here only to demonstrate correctness.
    key = jax.random.PRNGKey(0)
    k_params, k_emb, k_z = jax.random.split(key, 3)

    batch, action_size = 8, 16                      # state embedding size = 2 * action_size
    params = init_realnvp_params(k_params, action_size, 2 * action_size)
    state_embedding = jax.random.normal(k_emb, (batch, 2 * action_size), jnp.float32)
    z = jax.random.normal(k_z, (batch, action_size), jnp.float32)   # normal_sample(mu=0, sigma=1)

    action, log_pi = realnvp_policy_forward(state_embedding, z, params)
    jax.block_until_ready(action)
    jax.block_until_ready(log_pi)

    action_ref, log_pi_ref = _reference_forward(state_embedding, z, params)

    # Tolerances allow for MXU f32 matmul pass-count differences between the Pallas kernel and
    # the HIGHEST-precision XLA reference (actual error is typically ~1e-6).
    assert action.shape == (batch, action_size) and log_pi.shape == (batch,)
    assert jnp.allclose(action, action_ref, atol=2e-3, rtol=1e-3), (
        float(jnp.max(jnp.abs(action - action_ref))))
    assert jnp.allclose(log_pi, log_pi_ref, atol=2e-2, rtol=1e-3), (
        float(jnp.max(jnp.abs(log_pi - log_pi_ref))))

    print("KERNEL_OK")
</pallas_src>

<mosaic_0001>
module attributes {stable_mosaic.version = 11 : i64} {
  func.func @_realnvp_kernel(%arg0: i32, %arg1: memref<8x16xf32, #tpu.memory_space<vmem>>, %arg2: memref<8x32xf32, #tpu.memory_space<vmem>>, %arg3: memref<32x32xf32, #tpu.memory_space<vmem>>, %arg4: memref<8x32xf32, #tpu.memory_space<vmem>>, %arg5: memref<32x16xf32, #tpu.memory_space<vmem>>, %arg6: memref<1x16xf32, #tpu.memory_space<vmem>>, %arg7: memref<32x32xf32, #tpu.memory_space<vmem>>, %arg8: memref<8x32xf32, #tpu.memory_space<vmem>>, %arg9: memref<32x16xf32, #tpu.memory_space<vmem>>, %arg10: memref<1x16xf32, #tpu.memory_space<vmem>>, %arg11: memref<8x16xf32, #tpu.memory_space<vmem>>, %arg12: memref<1x8xf32, #tpu.memory_space<vmem>>) attributes {dimension_semantics = [#tpu.dimension_semantics<parallel>], iteration_bounds = array<i64: 1>, scalar_prefetch = 0 : i64, scratch_operands = 0 : i64, tpu.core_type = #tpu.core_type<tc>, window_params = [{transform_indices = @transform_0, window_bounds = array<i64: 8, 16>}, {transform_indices = @transform_1, window_bounds = array<i64: 8, 32>}, {pipeline_mode = #tpu.pipeline_mode<synchronous>, transform_indices = @transform_2, window_bounds = array<i64: 32, 32>}, {pipeline_mode = #tpu.pipeline_mode<synchronous>, transform_indices = @transform_3, window_bounds = array<i64: 8, 32>}, {pipeline_mode = #tpu.pipeline_mode<synchronous>, transform_indices = @transform_4, window_bounds = array<i64: 32, 16>}, {pipeline_mode = #tpu.pipeline_mode<synchronous>, transform_indices = @transform_5, window_bounds = array<i64: 1, 16>}, {pipeline_mode = #tpu.pipeline_mode<synchronous>, transform_indices = @transform_6, window_bounds = array<i64: 32, 32>}, {pipeline_mode = #tpu.pipeline_mode<synchronous>, transform_indices = @transform_7, window_bounds = array<i64: 8, 32>}, {pipeline_mode = #tpu.pipeline_mode<synchronous>, transform_indices = @transform_8, window_bounds = array<i64: 32, 16>}, {pipeline_mode = #tpu.pipeline_mode<synchronous>, transform_indices = @transform_9, window_bounds = array<i64: 1, 16>}, {transform_indices = @transform_10, window_bounds = array<i64: 8, 16>}, {transform_indices = @transform_11, window_bounds = array<i64: 1, 8>}]} {
    %c0 = arith.constant 0 : index
    %c0_0 = arith.constant 0 : index
    %0 = vector.load %arg1[%c0, %c0_0] : memref<8x16xf32, #tpu.memory_space<vmem>>, vector<8x16xf32>
    %c0_1 = arith.constant 0 : index
    %c0_2 = arith.constant 0 : index
    %1 = vector.load %arg2[%c0_1, %c0_2] : memref<8x32xf32, #tpu.memory_space<vmem>>, vector<8x32xf32>
    %2 = arith.mulf %0, %0 : vector<8x16xf32>
    %cst = arith.constant dense<0.000000e+00> : vector<8xf32>
    %3 = vector.multi_reduction <add>, %2, %cst [1] : vector<8x16xf32> to vector<8xf32>
    %cst_3 = arith.constant 5.000000e-01 : f32
    %4 = vector.broadcast %cst_3 : f32 to vector<8xf32>
    %5 = arith.mulf %4, %3 : vector<8xf32>
    %cst_4 = arith.constant -14.7030163 : f32
    %6 = vector.broadcast %cst_4 : f32 to vector<8xf32>
    %7 = arith.subf %6, %5 : vector<8xf32>
    %8 = vector.extract_strided_slice %0 {offsets = [0, 0], sizes = [8, 8], strides = [1, 1]} : vector<8x16xf32> to vector<8x8xf32>
    %9 = vector.extract_strided_slice %0 {offsets = [0, 8], sizes = [8, 8], strides = [1, 1]} : vector<8x16xf32> to vector<8x8xf32>
    %c0_5 = arith.constant 0 : index
    %c0_6 = arith.constant 0 : index
    %10 = vector.load %arg3[%c0_5, %c0_6] : memref<32x32xf32, #tpu.memory_space<vmem>>, vector<32x32xf32>
    %cst_7 = arith.constant dense<0.000000e+00> : vector<8x32xf32>
    %11 = tpu.matmul %1, %10, %cst_7 {dimension_numbers = #tpu.dot_dimension_numbers<[1], [0], [0], [1], [0, 0, 1, 1], [], []>} : vector<8x32xf32>, vector<32x32xf32>, vector<8x32xf32> -> vector<8x32xf32>
    %c0_8 = arith.constant 0 : index
    %c0_9 = arith.constant 0 : index
    %12 = vector.load %arg4[%c0_8, %c0_9] : memref<8x32xf32, #tpu.memory_space<vmem>>, vector<8x32xf32>
    %cst_10 = arith.constant dense<0.000000e+00> : vector<8x32xf32>
    %13 = tpu.matmul %8, %12, %cst_10 {dimension_numbers = #tpu.dot_dimension_numbers<[1], [0], [0], [1], [0, 0, 1, 1], [], []>} : vector<8x8xf32>, vector<8x32xf32>, vector<8x32xf32> -> vector<8x32xf32>
    %14 = arith.addf %11, %13 : vector<8x32xf32>
    %cst_11 = arith.constant 0.000000e+00 : f32
    %15 = vector.broadcast %cst_11 : f32 to vector<8x32xf32>
    %16 = arith.maximumf %14, %15 : vector<8x32xf32>
    %c0_12 = arith.constant 0 : index
    %c0_13 = arith.constant 0 : index
    %17 = vector.load %arg5[%c0_12, %c0_13] : memref<32x16xf32, #tpu.memory_space<vmem>>, vector<32x16xf32>
    %cst_14 = arith.constant dense<0.000000e+00> : vector<8x16xf32>
    %18 = tpu.matmul %16, %17, %cst_14 {dimension_numbers = #tpu.dot_dimension_numbers<[1], [0], [0], [1], [0, 0, 1, 1], [], []>} : vector<8x32xf32>, vector<32x16xf32>, vector<8x16xf32> -> vector<8x16xf32>
    %c0_15 = arith.constant 0 : index
    %c0_16 = arith.constant 0 : index
    %19 = vector.load %arg6[%c0_15, %c0_16] : memref<1x16xf32, #tpu.memory_space<vmem>>, vector<1x16xf32>
    %20 = vector.broadcast %19 : vector<1x16xf32> to vector<8x16xf32>
    %21 = arith.addf %18, %20 : vector<8x16xf32>
    %22 = vector.extract_strided_slice %21 {offsets = [0, 0], sizes = [8, 8], strides = [1, 1]} : vector<8x16xf32> to vector<8x8xf32>
    %23 = vector.extract_strided_slice %21 {offsets = [0, 8], sizes = [8, 8], strides = [1, 1]} : vector<8x16xf32> to vector<8x8xf32>
    %24 = math.exp %22 : vector<8x8xf32>
    %25 = arith.mulf %9, %24 : vector<8x8xf32>
    %26 = arith.addf %23, %25 : vector<8x8xf32>
    %cst_17 = arith.constant dense<0.000000e+00> : vector<8xf32>
    %27 = vector.multi_reduction <add>, %22, %cst_17 [1] : vector<8x8xf32> to vector<8xf32>
    %28 = arith.subf %7, %27 : vector<8xf32>
    %c0_18 = arith.constant 0 : index
    %c0_19 = arith.constant 0 : index
    %29 = vector.load %arg7[%c0_18, %c0_19] : memref<32x32xf32, #tpu.memory_space<vmem>>, vector<32x32xf32>
    %cst_20 = arith.constant dense<0.000000e+00> : vector<8x32xf32>
    %30 = tpu.matmul %1, %29, %cst_20 {dimension_numbers = #tpu.dot_dimension_numbers<[1], [0], [0], [1], [0, 0, 1, 1], [], []>} : vector<8x32xf32>, vector<32x32xf32>, vector<8x32xf32> -> vector<8x32xf32>
    %c0_21 = arith.constant 0 : index
    %c0_22 = arith.constant 0 : index
    %31 = vector.load %arg8[%c0_21, %c0_22] : memref<8x32xf32, #tpu.memory_space<vmem>>, vector<8x32xf32>
    %cst_23 = arith.constant dense<0.000000e+00> : vector<8x32xf32>
    %32 = tpu.matmul %26, %31, %cst_23 {dimension_numbers = #tpu.dot_dimension_numbers<[1], [0], [0], [1], [0, 0, 1, 1], [], []>} : vector<8x8xf32>, vector<8x32xf32>, vector<8x32xf32> -> vector<8x32xf32>
    %33 = arith.addf %30, %32 : vector<8x32xf32>
    %cst_24 = arith.constant 0.000000e+00 : f32
    %34 = vector.broadcast %cst_24 : f32 to vector<8x32xf32>
    %35 = arith.maximumf %33, %34 : vector<8x32xf32>
    %c0_25 = arith.constant 0 : index
    %c0_26 = arith.constant 0 : index
    %36 = vector.load %arg9[%c0_25, %c0_26] : memref<32x16xf32, #tpu.memory_space<vmem>>, vector<32x16xf32>
    %cst_27 = arith.constant dense<0.000000e+00> : vector<8x16xf32>
    %37 = tpu.matmul %35, %36, %cst_27 {dimension_numbers = #tpu.dot_dimension_numbers<[1], [0], [0], [1], [0, 0, 1, 1], [], []>} : vector<8x32xf32>, vector<32x16xf32>, vector<8x16xf32> -> vector<8x16xf32>
    %c0_28 = arith.constant 0 : index
    %c0_29 = arith.constant 0 : index
    %38 = vector.load %arg10[%c0_28, %c0_29] : memref<1x16xf32, #tpu.memory_space<vmem>>, vector<1x16xf32>
    %39 = vector.broadcast %38 : vector<1x16xf32> to vector<8x16xf32>
    %40 = arith.addf %37, %39 : vector<8x16xf32>
    %41 = vector.extract_strided_slice %40 {offsets = [0, 0], sizes = [8, 8], strides = [1, 1]} : vector<8x16xf32> to vector<8x8xf32>
    %42 = vector.extract_strided_slice %40 {offsets = [0, 8], sizes = [8, 8], strides = [1, 1]} : vector<8x16xf32> to vector<8x8xf32>
    %43 = math.exp %41 : vector<8x8xf32>
    %44 = arith.mulf %8, %43 : vector<8x8xf32>
    %45 = arith.addf %42, %44 : vector<8x8xf32>
    %cst_30 = arith.constant dense<0.000000e+00> : vector<8xf32>
    %46 = vector.multi_reduction <add>, %41, %cst_30 [1] : vector<8x8xf32> to vector<8xf32>
    %47 = arith.subf %28, %46 : vector<8xf32>
    %48 = math.absf %45 : vector<8x8xf32>
    %cst_31 = arith.constant -2.000000e+00 : f32
    %49 = vector.broadcast %cst_31 : f32 to vector<8x8xf32>
    %50 = arith.mulf %49, %48 : vector<8x8xf32>
    %51 = math.exp %50 : vector<8x8xf32>
    %cst_32 = arith.constant 2.000000e+00 : f32
    %52 = vector.broadcast %cst_32 : f32 to vector<8x8xf32>
    %53 = arith.mulf %52, %45 : vector<8x8xf32>
    %cst_33 = arith.constant 0.000000e+00 : f32
    %54 = vector.broadcast %cst_33 : f32 to vector<8x8xf32>
    %55 = arith.maximumf %53, %54 : vector<8x8xf32>
    %56 = math.log1p %51 : vector<8x8xf32>
    %57 = arith.addf %55, %56 : vector<8x8xf32>
    %cst_34 = arith.constant 0.693147182 : f32
    %58 = vector.broadcast %cst_34 : f32 to vector<8x8xf32>
    %59 = arith.addf %58, %45 : vector<8x8xf32>
    %60 = arith.subf %59, %57 : vector<8x8xf32>
    %cst_35 = arith.constant 2.000000e+00 : f32
    %61 = vector.broadcast %cst_35 : f32 to vector<8x8xf32>
    %62 = arith.mulf %61, %60 : vector<8x8xf32>
    %cst_36 = arith.constant 0.000000e+00 : f32
    %63 = vector.broadcast %cst_36 : f32 to vector<8x8xf32>
    %64 = arith.cmpf olt, %45, %63 : vector<8x8xf32>
    %cst_37 = arith.constant -1.000000e+00 : f32
    %cst_38 = arith.constant 1.000000e+00 : f32
    %65 = vector.broadcast %cst_37 : f32 to vector<8x8xf32>
    %66 = vector.broadcast %cst_38 : f32 to vector<8x8xf32>
    %67 = arith.select %64, %65, %66 : vector<8x8xi1>, vector<8x8xf32>
    %cst_39 = arith.constant 1.000000e+00 : f32
    %68 = vector.broadcast %cst_39 : f32 to vector<8x8xf32>
    %69 = arith.subf %68, %51 : vector<8x8xf32>
    %70 = arith.mulf %67, %69 : vector<8x8xf32>
    %cst_40 = arith.constant 1.000000e+00 : f32
    %71 = vector.broadcast %cst_40 : f32 to vector<8x8xf32>
    %72 = arith.addf %71, %51 : vector<8x8xf32>
    %73 = arith.divf %70, %72 : vector<8x8xf32>
    %cst_41 = arith.constant dense<0.000000e+00> : vector<8xf32>
    %74 = vector.multi_reduction <add>, %62, %cst_41 [1] : vector<8x8xf32> to vector<8xf32>
    %75 = math.absf %26 : vector<8x8xf32>
    %cst_42 = arith.constant -2.000000e+00 : f32
    %76 = vector.broadcast %cst_42 : f32 to vector<8x8xf32>
    %77 = arith.mulf %76, %75 : vector<8x8xf32>
    %78 = math.exp %77 : vector<8x8xf32>
    %cst_43 = arith.constant 2.000000e+00 : f32
    %79 = vector.broadcast %cst_43 : f32 to vector<8x8xf32>
    %80 = arith.mulf %79, %26 : vector<8x8xf32>
    %cst_44 = arith.constant 0.000000e+00 : f32
    %81 = vector.broadcast %cst_44 : f32 to vector<8x8xf32>
    %82 = arith.maximumf %80, %81 : vector<8x8xf32>
    %83 = math.log1p %78 : vector<8x8xf32>
    %84 = arith.addf %82, %83 : vector<8x8xf32>
    %cst_45 = arith.constant 0.693147182 : f32
    %85 = vector.broadcast %cst_45 : f32 to vector<8x8xf32>
    %86 = arith.addf %85, %26 : vector<8x8xf32>
    %87 = arith.subf %86, %84 : vector<8x8xf32>
    %cst_46 = arith.constant 2.000000e+00 : f32
    %88 = vector.broadcast %cst_46 : f32 to vector<8x8xf32>
    %89 = arith.mulf %88, %87 : vector<8x8xf32>
    %cst_47 = arith.constant 0.000000e+00 : f32
    %90 = vector.broadcast %cst_47 : f32 to vector<8x8xf32>
    %91 = arith.cmpf olt, %26, %90 : vector<8x8xf32>
    %cst_48 = arith.constant -1.000000e+00 : f32
    %cst_49 = arith.constant 1.000000e+00 : f32
    %92 = vector.broadcast %cst_48 : f32 to vector<8x8xf32>
    %93 = vector.broadcast %cst_49 : f32 to vector<8x8xf32>
    %94 = arith.select %91, %92, %93 : vector<8x8xi1>, vector<8x8xf32>
    %cst_50 = arith.constant 1.000000e+00 : f32
    %95 = vector.broadcast %cst_50 : f32 to vector<8x8xf32>
    %96 = arith.subf %95, %78 : vector<8x8xf32>
    %97 = arith.mulf %94, %96 : vector<8x8xf32>
    %cst_51 = arith.constant 1.000000e+00 : f32
    %98 = vector.broadcast %cst_51 : f32 to vector<8x8xf32>
    %99 = arith.addf %98, %78 : vector<8x8xf32>
    %100 = arith.divf %97, %99 : vector<8x8xf32>
    %cst_52 = arith.constant dense<0.000000e+00> : vector<8xf32>
    %101 = vector.multi_reduction <add>, %89, %cst_52 [1] : vector<8x8xf32> to vector<8xf32>
    %102 = arith.subf %47, %74 : vector<8xf32>
    %103 = arith.subf %102, %101 : vector<8xf32>
    %c0_53 = arith.constant 0 : index
    %c0_54 = arith.constant 0 : index
    %104 = vector.load %arg11[%c0_53, %c0_54] : memref<8x16xf32, #tpu.memory_space<vmem>>, vector<8x8xf32>
    tpu.vector_store %arg11[%c0_53, %c0_54], %73 {strides = array<i32>} : memref<8x16xf32, #tpu.memory_space<vmem>>, vector<8x8xf32>,
    %c0_55 = arith.constant 0 : index
    %c8 = arith.constant 8 : index
    %105 = vector.load %arg11[%c0_55, %c8] : memref<8x16xf32, #tpu.memory_space<vmem>>, vector<8x8xf32>
    tpu.vector_store %arg11[%c0_55, %c8], %100 {strides = array<i32>} : memref<8x16xf32, #tpu.memory_space<vmem>>, vector<8x8xf32>,
    %106 = vector.shape_cast %103 : vector<8xf32> to vector<1x8xf32>
    %c0_56 = arith.constant 0 : index
    %c0_57 = arith.constant 0 : index
    %107 = vector.load %arg12[%c0_56, %c0_57] : memref<1x8xf32, #tpu.memory_space<vmem>>, vector<1x8xf32>
    tpu.vector_store %arg12[%c0_56, %c0_57], %106 {strides = array<i32>} : memref<1x8xf32, #tpu.memory_space<vmem>>, vector<1x8xf32>,
    return
  }
  func.func @transform_0(%arg0: i32) -> (i32, i32) {
    %c0_i32 = arith.constant 0 : i32
    %c0_i32_0 = arith.constant 0 : i32
    return %arg0, %c0_i32 : i32, i32
  }
  func.func @transform_1(%arg0: i32) -> (i32, i32) {
    %c0_i32 = arith.constant 0 : i32
    %c0_i32_0 = arith.constant 0 : i32
    return %arg0, %c0_i32 : i32, i32
  }
  func.func @transform_2(%arg0: i32) -> (i32, i32) {
    %c0_i32 = arith.constant 0 : i32
    %c0_i32_0 = arith.constant 0 : i32
    %c0_i32_1 = arith.constant 0 : i32
    return %c0_i32, %c0_i32_0 : i32, i32
  }
  func.func @transform_3(%arg0: i32) -> (i32, i32) {
    %c0_i32 = arith.constant 0 : i32
    %c0_i32_0 = arith.constant 0 : i32
    %c0_i32_1 = arith.constant 0 : i32
    return %c0_i32, %c0_i32_0 : i32, i32
  }
  func.func @transform_4(%arg0: i32) -> (i32, i32) {
    %c0_i32 = arith.constant 0 : i32
    %c0_i32_0 = arith.constant 0 : i32
    %c0_i32_1 = arith.constant 0 : i32
    return %c0_i32, %c0_i32_0 : i32, i32
  }
  func.func @transform_5(%arg0: i32) -> (i32, i32) {
    %c0_i32 = arith.constant 0 : i32
    %c0_i32_0 = arith.constant 0 : i32
    %c0_i32_1 = arith.constant 0 : i32
    return %c0_i32, %c0_i32_0 : i32, i32
  }
  func.func @transform_6(%arg0: i32) -> (i32, i32) {
    %c0_i32 = arith.constant 0 : i32
    %c0_i32_0 = arith.constant 0 : i32
    %c0_i32_1 = arith.constant 0 : i32
    return %c0_i32, %c0_i32_0 : i32, i32
  }
  func.func @transform_7(%arg0: i32) -> (i32, i32) {
    %c0_i32 = arith.constant 0 : i32
    %c0_i32_0 = arith.constant 0 : i32
    %c0_i32_1 = arith.constant 0 : i32
    return %c0_i32, %c0_i32_0 : i32, i32
  }
  func.func @transform_8(%arg0: i32) -> (i32, i32) {
    %c0_i32 = arith.constant 0 : i32
    %c0_i32_0 = arith.constant 0 : i32
    %c0_i32_1 = arith.constant 0 : i32
    return %c0_i32, %c0_i32_0 : i32, i32
  }
  func.func @transform_9(%arg0: i32) -> (i32, i32) {
    %c0_i32 = arith.constant 0 : i32
    %c0_i32_0 = arith.constant 0 : i32
    %c0_i32_1 = arith.constant 0 : i32
    return %c0_i32, %c0_i32_0 : i32, i32
  }
  func.func @transform_10(%arg0: i32) -> (i32, i32) {
    %c0_i32 = arith.constant 0 : i32
    %c0_i32_0 = arith.constant 0 : i32
    return %arg0, %c0_i32 : i32, i32
  }
  func.func @transform_11(%arg0: i32) -> (i32, i32) {
    %c0_i32 = arith.constant 0 : i32
    %c0_i32_0 = arith.constant 0 : i32
    return %c0_i32, %arg0 : i32, i32
  }
}

</mosaic_0001>

<bundles_post_ra>
// kernel: tpu_custom_call.1
= control target key start
LH: loop header
LB: loop body
LE: loop exit
PB: predicated region body
PF: predicated region fallthrough
CT: control target
= control target key end

     0   :  { %17 = vsyncpa [#allocation3], 0  ;;  %s743_s0 = inlined_call_operand.vmem [shape: f32[8,16], index: 0, kind: input, shape index: {}]   ;;  %s744_s1 = inlined_call_operand.vmem [shape: f32[8,32], index: 1, kind: input, shape index: {}]   ;;  %s745_s2 = inlined_call_operand.vmem [shape: f32[32,32], index: 2, kind: input, shape index: {}]   ;;  %s746_s3 = inlined_call_operand.hbm [shape: f32[8,32], index: 3, kind: input, shape index: {}]   ;;  %s747_s4 = inlined_call_operand.vmem [shape: f32[32,16], index: 4, kind: input, shape index: {}]   ;;  %s748_s5 = inlined_call_operand.vmem [shape: f32[1,16], index: 5, kind: input, shape index: {}]   ;;  %s749_s6 = inlined_call_operand.vmem [shape: f32[32,32], index: 6, kind: input, shape index: {}]   ;;  %s750_s7 = inlined_call_operand.hbm [shape: f32[8,32], index: 7, kind: input, shape index: {}]   ;;  %s751_s8 = inlined_call_operand.vmem [shape: f32[32,16], index: 8, kind: input, shape index: {}]   ;;  %s752_s9 = inlined_call_operand.vmem [shape: f32[1,16], index: 9, kind: input, shape index: {}]   ;;  %s753_s10 = inlined_call_operand.hbm [shape: f32[8,16], index: 10, kind: output, shape index: {0}]   ;;  %s754_s11 = inlined_call_operand.hbm [shape: f32[1,8], index: 11, kind: output, shape index: {1}]  }
   0x1   :  { %18 = vsyncpa [#allocation6], 0 }
   0x2   :  { %19 = vsyncpa [#allocation4], 0 }
   0x3   :  { %20 = vsyncpa [#allocation9], 0  ;;  %s32_s19 = sshll.u32 %s746_s3, 4  ;;  %s544_s20 = smov [#allocation2]   ;;  %s33_s19 = int_to_ptr.hbm [resolvable:$true] %s32_s19 }
   0x4   :  { %s34_s21 = sshll.u32 %s544_s20, 4  ;;  %s49_s24 = sshll.u32 %s750_s7, 4  ;;  %s35_s21 = int_to_ptr.vmem [resolvable:$true] %s34_s21  ;;  %s50_s24 = int_to_ptr.hbm [resolvable:$true] %s49_s24 }
   0x5   :  { %37 = dma.hbm_to_vmem [thread:$0]  %s33_s19, 128, %s35_s21, [#allocation3]  }
   0x6   :  { %s545_s25 = smov [#allocation5]  }
   0x7   :  { %s51_s26 = sshll.u32 %s545_s25, 4  ;;  %s52_s26 = int_to_ptr.vmem [resolvable:$true] %s51_s26 }
   0x8   :  { %54 = dma.hbm_to_vmem [thread:$0]  %s50_s24, 128, %s52_s26, [#allocation6]  }
   0x9   :  { %536 = dma.done.wait [#allocation3], 128  }
   0xa   :  { %537 = vsyncadd [#allocation3], 4294967168 }
   0xb   :  { %538 = dma.done.wait [#allocation6], 128  }
   0xc   :  { %539 = vsyncadd [#allocation6], 4294967168  ;;  %v79_v0 = vld [vmem:[%s745_s2 + $0x18] sm:$0xff]  ;;  %v78_v1 = vld [vmem:[%s745_s2 + $0x10] sm:$0xff]  ;;  %vm81_vm0 = vcmask 64512   ;;  %vm105_vm1 = vcmask 261120  }
   0xd   :  { %121 = vmatpush.msra.mxu1 %v79_v0  ;;  %v80_v2 = vld [vmem:[#allocation2] sm:$0xff]  ;;  %v77_v4 = vld [vmem:[%s745_s2 + $0x8] sm:$0xff]  ;;  %v133_v5 = vld [vmem:[%s747_s4 + $0x18] sm:$0xff]  ;;  %s546_s25 = smov 8   ;;  %v548_v31 = vmov 1.0   ;;  %vm70_vm7 = vcmask 130048  }
   0xe   :  { %v626_v3 = vld [vmem:[%s743_s0] sm:$0xff]  ;;  %100 = vmatpush.msra.mxu0 %v80_v2  ;;  %153 = vmatpush.msra.mxu2 %v133_v5  ;;  %v132_v8 = vld [vmem:[%s747_s4 + $0x10] sm:$0xff]  ;;  %v131_v9 = vld [vmem:[%s747_s4 + $0x8] sm:$0xff]  ;;  %s382_s22 = sshll.u32 %s753_s10, 4  ;;  %vm366_vm15 = vcmask 130112   ;;  %s550_s10 = smov [#allocation8]   ;;  %s383_s22 = int_to_ptr.hbm [resolvable:$true] %s382_s22 }
   0xf   :  { %122 = vmatpush.msra.mxu1 %v78_v1  ;;  %409 = vmatmul.msk.f32.vlgmr.msra.gmra.mxu0 %vm81_vm0, %v626_v3  ;;  %v76_v6 = vld [vmem:[%s745_s2] sm:$0xff]  ;;  %v176_v26 = vld [vmem:[%s749_s6 + $0x18] sm:$0xff]  ;;  %v177_v27 = vld [vmem:[#allocation5] sm:$0xff]  ;;  %v69_v0 = vmul.f32 %v626_v3, %v626_v3  ;;  %s391_s2 = sshll.u32 %s550_s10, 4  ;;  %s393_s24 = sshll.u32 %s754_s11, 4  ;;  %s392_s2 = int_to_ptr.vmem [resolvable:$true] %s391_s2  ;;  %s394_s24 = int_to_ptr.hbm [resolvable:$true] %s393_s24 }
  0x10   :  { %v642_v7 = vld [vmem:[%s744_s1] sm:$0xff]  ;;  %154 = vmatpush.msra.mxu2 %v132_v8  ;;  %215 = vmatpush.msrb.mxu0 %v176_v26  ;;  %v175_v46 = vld [vmem:[%s749_s6 + $0x10] sm:$0xff]  ;;  %v174_v47 = vld [vmem:[%s749_s6 + $0x8] sm:$0xff] }
  0x11   :  { %123 = vmatpush.msra.mxu1 %v77_v4  ;;  %v130_v10 = vld [vmem:[%s747_s4] sm:$0xff]  ;;  %s547_s4 = smov 120   ;;  %198 = vmatpush.msra.mxu3 %v177_v27  ;;  %v227_v50 = vld [vmem:[%s751_s8 + $0x18] sm:$0xff]  ;;  %v226_v51 = vld [vmem:[%s751_s8 + $0x10] sm:$0xff]  ;;  %v71_v1 = vsel %vm70_vm7, %v69_v0, 0.0 }
  0x12   :  { %155 = vmatpush.msra.mxu2 %v131_v9  ;;  %v422_v15 = vld [vmem:[%s748_s5] ss:$0 sm:$0xff]  ;;  %216 = vmatpush.msrb.mxu0 %v175_v46  ;;  %v225_v52 = vld [vmem:[%s751_s8 + $0x8] sm:$0xff] }
  0x13   :  { %124 = vmatpush.msra.mxu1 %v76_v6  ;;  %v173_v48 = vld [vmem:[%s749_s6] sm:$0xff]  ;;  %247 = vmatpush.msrb.mxu3 %v227_v50 }
  0x14   :  { %410 = vmatmul.msk.f32.vlgmr.msra.gmra.mxu1 %vm105_vm1, %v642_v7  ;;  %156 = vmatpush.msra.mxu2 %v130_v10  ;;  %v224_v53 = vld [vmem:[%s751_s8] sm:$0xff]  ;;  %s549_s8 = smov [#allocation7]  }
  0x15   :  { %217 = vmatpush.msrb.mxu0 %v174_v47  ;;  %248 = vmatpush.msrb.mxu3 %v226_v51  ;;  %v423_v58 = vld [vmem:[%s752_s9] ss:$0 sm:$0xff]  ;;  %s380_s9 = sshll.u32 %s549_s8, 4  ;;  %s381_s9 = int_to_ptr.vmem [resolvable:$true] %s380_s9 }
  0x17   :  { %218 = vmatpush.msrb.mxu0 %v173_v48  ;;  %249 = vmatpush.msrb.mxu3 %v225_v52 }
  0x18   :  { %413 = vmatmul.msk.f32.vlgmr.msrb.gmra.mxu0 %vm105_vm1, %v642_v7 }
  0x19   :  { %250 = vmatpush.msrb.mxu3 %v224_v53 }
  0x8c   :  { %v102_v11 = vpop.f32.mrf.mxu0 }
  0x91   :  { %v126_v12 = vpop.f32.mrf.mxu1 }
  0x92   :  { %v127_v13 = vadd.f32 %v126_v12, %v102_v11 }
  0x94   :  { %v129_v14 = vmax.f32 %v127_v13, 0.0 }
  0x95   :  { %v220_v54 = vpop.f32.mrf.mxu0 }
  0x96   :  { %411 = vmatmul.msk.f32.vlgmr.msra.gmra.mxu2 %vm105_vm1, %v129_v14 }
 0x119   :  { %v158_v16 = vpop.f32.mrf.mxu2 }
 0x11a   :  { %v159_v17 = vadd.f32 %v422_v15, %v158_v16 }
 0x11c   :  { %v161_v18 = vmul.f32 1.442695, %v159_v17  ;;  %v169_v45 = vsel %vm81_vm0, %v159_v17, 0.0 }
 0x11e   :  { %424 = vpow2.f32 %v161_v18 }
 0x124   :  { %v425_v19 = vpop.eup %424 }
 0x125   :  { %164 = vrot.lane.b32.xlu0 %v425_v19, %s546_s25 }
 0x197   :  { %v165_v20 = vpop.permute.xlu0 %164 }
 0x198   :  { %v167_v21 = vmul.f32 %v165_v20, %v626_v3 }
 0x19a   :  { %v661_v22 = vadd.f32 %v167_v21, %v159_v17 }
 0x19c   :  { %v313_v23 = vand.u32 2147483647, %v661_v22  ;;  %179 = vrot.lane.b32.xlu0 %v661_v22, %s547_s4  ;;  %vm332_vm2 = vcmp.lt.f32.partialorder %v661_v22, 0.0  ;;  %v317_v15 = vmul.f32 2.0, %v661_v22  ;;  %v329_v47 = vadd.f32 0.6931472, %v661_v22 }
 0x19d   :  { %v333_v32 = vsel %vm332_vm2, -1.0, %v548_v31 }
 0x19e   :  { %v314_v24 = vmul.f32 -2.0, %v313_v23  ;;  %v318_v27 = vmax.f32 %v317_v15, 0.0 }
 0x1a0   :  { %v315_v25 = vmul.f32 1.442695, %v314_v24 }
 0x1a2   :  { %426 = vpow2.f32 %v315_v25 }
 0x1a8   :  { %v670_v28 = vpop.eup %426 }
 0x1a9   :  { %v334_v29 = vsub.f32 1.0, %v670_v28  ;;  %v674_v30 = vadd.f32 1.0, %v670_v28  ;;  %v322_v11 = vmul.f32 -0.5, %v670_v28  ;;  %v325_v18 = vand.u32 2147483647, %v670_v28 }
 0x1ab   :  { %v335_v33 = vmul.f32 %v334_v29, %v333_v32  ;;  %428 = vrcp.f32 %v674_v30  ;;  %v348_v37 = vand.u32 2147483648, %v674_v30  ;;  %v346_v39 = vand.u32 2147483647, %v674_v30 }
 0x1ac   :  { %vm342_vm4 = vweird.f32 %v674_v30  ;;  %v323_v16 = vadd.f32 1.0, %v322_v11  ;;  %vm326_vm9 = vcmp.lt.f32.partialorder %v325_v18, 0.0004427343 }
 0x1ad   :  { %v349_v41 = vor.u32 1.1754944e-38, %v348_v37  ;;  %vm347_vm6 = vcmp.eq.f32.partialorder %v346_v39, 8.507059e+37 }
 0x1ae   :  { %v324_v29 = vmul.f32 %v670_v28, %v323_v16 }
 0x1b1   :  { %v429_v34 = vpop.eup %428 }
 0x1b2   :  { %v338_v35 = vmul.f32 %v429_v34, %v674_v30  ;;  %vm343_vm3 = vweird.f32 %v429_v34 }
 0x1b3   :  { %vm344_vm5 = vmor %vm342_vm4, %vm343_vm3 }
 0x1b4   :  { %v339_v36 = vsub.f32 1.0, %v338_v35 }
 0x1b6   :  { %v340_v38 = vmul.f32 %v429_v34, %v339_v36 }
 0x1b8   :  { %v341_v40 = vadd.f32 %v429_v34, %v340_v38 }
 0x1ba   :  { %v345_v42 = vsel %vm344_vm5, %v429_v34, %v341_v40 }
 0x1bb   :  { %v350_v43 = vsel %vm347_vm6, %v349_v41, %v345_v42 }
 0x1bc   :  { %v682_v44 = vmul.f32 %v350_v43, %v335_v33 }
 0x1c6   :  { %170 = vadd.xlane.f32.xlu0 %v169_v45 }
 0x20e   :  { %v180_v49 = vpop.permute.xlu0 %179 }
 0x20f   :  { %412 = vmatmul.msk.f32.vlgmr.msra.gmra.mxu3 %vm81_vm0, %v180_v49 }
 0x239   :  { %v171_v22 = vpop.xlane.xlu0 %170 }
 0x292   :  { %v200_v55 = vpop.f32.mrf.mxu3 }
 0x293   :  { %v221_v56 = vadd.f32 %v220_v54, %v200_v55 }
 0x295   :  { %v223_v57 = vmax.f32 %v221_v56, 0.0 }
 0x297   :  { %414 = vmatmul.msk.f32.vlgmr.msrb.gmra.mxu3 %vm105_vm1, %v223_v57 }
 0x31a   :  { %v252_v59 = vpop.f32.mrf.mxu3 }
 0x31b   :  { %v713_v60 = vadd.f32 %v423_v58, %v252_v59 }
 0x31d   :  { %v255_v61 = vmul.f32 1.442695, %v713_v60 }
 0x31f   :  { %430 = vpow2.f32 %v255_v61 }
 0x325   :  { %v431_v62 = vpop.eup %430 }
 0x326   :  { %v257_v63 = vmul.f32 %v431_v62, %v626_v3  ;;  %v369_v62 = vlaneseq }
 0x328   :  { %259 = vrot.lane.b32.xlu1 %v257_v63, %s546_s25 }
 0x352   :  { %72 = vadd.xlane.f32.xlu1 %v71_v1 }
 0x39a   :  { %v260_v2 = vpop.permute.xlu1 %259 }
 0x39b   :  { %v262_v4 = vadd.f32 %v260_v2, %v713_v60  ;;  %v370_v2 = vand.u32 127, %v369_v62 }
 0x39d   :  { %v267_v5 = vand.u32 2147483647, %v262_v4  ;;  %v271_v13 = vmul.f32 2.0, %v262_v4  ;;  %v283_v32 = vadd.f32 0.6931472, %v262_v4  ;;  %vm286_vm10 = vcmp.lt.f32.partialorder %v262_v4, 0.0 }
 0x39e   :  { %v287_v43 = vsel %vm286_vm10, -1.0, %v548_v31  ;;  %v263_v31 = vsel %vm81_vm0, %v713_v60, 0.0 }
 0x39f   :  { %v268_v6 = vmul.f32 -2.0, %v267_v5  ;;  %v272_v24 = vmax.f32 %v271_v13, 0.0 }
 0x3a1   :  { %v269_v7 = vmul.f32 1.442695, %v268_v6 }
 0x3a3   :  { %432 = vpow2.f32 %v269_v7 }
 0x3a4   :  { %434 = vlog2.f32 %v674_v30 }
 0x3a9   :  { %v433_v8 = vpop.eup %432 }
 0x3aa   :  { %v273_v9 = vadd.f32 1.0, %v433_v8  ;;  %v276_v10 = vmul.f32 -0.5, %v433_v8  ;;  %v435_v12 = vpop.eup %434  ;;  %v279_v14 = vand.u32 2147483647, %v433_v8  ;;  %v288_v34 = vsub.f32 1.0, %v433_v8 }
 0x3ab   :  { %v321_v23 = vmul.f32 0.6931472, %v435_v12 }
 0x3ac   :  { %436 = vlog2.f32 %v273_v9  ;;  %v277_v3 = vadd.f32 1.0, %v276_v10  ;;  %vm280_vm8 = vcmp.lt.f32.partialorder %v279_v14, 0.0004427343  ;;  %v302_v35 = vand.u32 2147483648, %v273_v9 }
 0x3ad   :  { %438 = vrcp.f32 %v273_v9  ;;  %v327_v36 = vsel %vm326_vm9, %v324_v29, %v321_v23  ;;  %v300_v39 = vand.u32 2147483647, %v273_v9  ;;  %vm296_vm12 = vweird.f32 %v273_v9 }
 0x3ae   :  { %v278_v21 = vmul.f32 %v433_v8, %v277_v3  ;;  %v328_v42 = vadd.f32 %v327_v36, %v318_v27  ;;  %v303_v28 = vor.u32 1.1754944e-38, %v302_v35  ;;  %v289_v45 = vmul.f32 %v288_v34, %v287_v43 }
 0x3af   :  { %vm301_vm14 = vcmp.eq.f32.partialorder %v300_v39, 8.507059e+37 }
 0x3b0   :  { %v330_v50 = vsub.f32 %v329_v47, %v328_v42 }
 0x3b2   :  { %v437_v17 = vpop.eup %436  ;;  %v331_v51 = vmul.f32 2.0, %v330_v50 }
 0x3b3   :  { %v439_v19 = vpop.eup %438  ;;  %v275_v20 = vmul.f32 0.6931472, %v437_v17 }
 0x3b4   :  { %v292_v25 = vmul.f32 %v439_v19, %v273_v9  ;;  %vm297_vm11 = vweird.f32 %v439_v19 }
 0x3b5   :  { %v281_v26 = vsel %vm280_vm8, %v278_v21, %v275_v20  ;;  %vm298_vm13 = vmor %vm296_vm12, %vm297_vm11 }
 0x3b6   :  { %v282_v30 = vadd.f32 %v281_v26, %v272_v24  ;;  %v293_v33 = vsub.f32 1.0, %v292_v25 }
 0x3b8   :  { %v284_v37 = vsub.f32 %v283_v32, %v282_v30  ;;  %v294_v38 = vmul.f32 %v439_v19, %v293_v33 }
 0x3ba   :  { %v285_v40 = vmul.f32 2.0, %v284_v37  ;;  %v295_v41 = vadd.f32 %v439_v19, %v294_v38 }
 0x3bc   :  { %307 = vrot.lane.b32.xlu2 %v285_v40, %s547_s4  ;;  %v299_v46 = vsel %vm298_vm13, %v439_v19, %v295_v41 }
 0x3bd   :  { %v304_v48 = vsel %vm301_vm14, %v303_v28, %v299_v46 }
 0x3be   :  { %v305_v49 = vmul.f32 %v304_v48, %v289_v45 }
 0x3c0   :  { %362 = vrot.lane.b32.xlu0 %v305_v49, %s547_s4 }
 0x3c4   :  { %353 = vrot.lane.b32.xlu2 %v331_v51, %s547_s4 }
 0x3c5   :  { %v73_v57 = vpop.xlane.xlu1 %72 }
 0x3c6   :  { %v74_v58 = vmul.f32 0.5, %v73_v57 }
 0x3c8   :  { %v75_v59 = vsub.f32 -14.703016, %v74_v58 }
 0x3ca   :  { %v172_v61 = vsub.f32 %v75_v59, %v171_v22 }
 0x3ed   :  { %264 = vadd.xlane.f32.xlu2 %v263_v31 }
 0x416   :  { %v308_v52 = vpop.permute.xlu2 %307 }
 0x417   :  { %v310_v53 = vsel %vm81_vm0, %v308_v52, 0.0 }
 0x418   :  { %311 = vadd.xlane.f32.xlu1 %v310_v53 }
 0x41e   :  { %v354_v54 = vpop.permute.xlu2 %353 }
 0x41f   :  { %v356_v55 = vsel %vm81_vm0, %v354_v54, 0.0 }
 0x420   :  { %357 = vadd.xlane.f32.xlu2 %v356_v55 }
 0x432   :  { %v363_v56 = vpop.permute.xlu0 %362 }
 0x433   :  { %365 = vst.msk [vmem:[#allocation7] sm:$0xff] %vm81_vm0, %v363_v56  ;;  %vm373_vm0 = vcmask 57344  }
 0x434   :  { %367 = vst.msk [vmem:[#allocation7] sm:$0xff] %vm366_vm15, %v682_v44 }
 0x435   :  { %385 = dma.vmem_to_hbm [thread:$0]  %s381_s9, 128, %s383_s22, [#allocation4]  }
 0x460   :  { %v265_v60 = vpop.xlane.xlu2 %264 }
 0x461   :  { %v266_v0 = vsub.f32 %v172_v61, %v265_v60 }
 0x48b   :  { %v312_v63 = vpop.xlane.xlu1 %311 }
 0x48c   :  { %v359_v1 = vsub.f32 %v266_v0, %v312_v63 }
 0x493   :  { %v358_v4 = vpop.xlane.xlu2 %357 }
 0x494   :  { %v360_v5 = vsub.f32 %v359_v1, %v358_v4 }
 0x496   :  { %v371_v44 = vperm.slane %v360_v5, %v370_v2 }
 0x498   :  { %374 = vst.msk [vmem:[#allocation8] sm:$0x1] %vm373_vm0, %v371_v44 }
 0x499   :  { %396 = dma.vmem_to_hbm [thread:$0]  %s392_s2, 16, %s394_s24, [#allocation9]  }
 0x49a   :  { %540 = dma.done.wait [#allocation4], 128  }
 0x49b   :  { %541 = vsyncadd [#allocation4], 4294967168 }
 0x49c   :  { %542 = dma.done.wait [#allocation9], 16  }
 0x49d   :  { %543 = vsyncadd [#allocation9], 4294967280 }
 0x49e   :  { %405 = vsyncpa [#allocation3], 1 }
 0x49f   :  { %406 = vsyncpa [#allocation6], 1 }
 0x4a0   :  { %407 = vsyncpa [#allocation4], 1 }
 0x4a1   :  { %408 = vsyncpa [#allocation9], 1 }

</bundles_post_ra>
